<compile_context>
chip_gen: v7x
topology: tpu7x:2x2x1
jax: 0.10.0
libtpu: 0.0.40
codegen_flags: <defaults>
</compile_context>

<pallas_src>
import jax
import jax.numpy as jnp
from jax import lax
from jax.experimental import pallas as pl
from jax.experimental.pallas import tpu as pltpu


def _down_conv_kernel(x_ref, w0_ref, w1_ref, b_ref, o_ref):
    """One (batch n, row-tile h) grid step.

    x_ref : (1, TH, 2*Cin, Wo+1) kh-stacked taps of the odd-subsampled input
    w0_ref: (Cout, 2*Cin)        weights for kw=0 (channel order [kh=0 | kh=1])
    w1_ref: (Cout, 2*Cin)        weights for kw=1
    b_ref : (Cout, 1)            bias
    o_ref : (1, Cout, TH, Wo)    NCHW output tile
    """
    w0 = w0_ref[...]
    w1 = w1_ref[...]
    b = b_ref[...]                     # (Cout, 1) - hoisted out of the row loop
    th = o_ref.shape[2]
    wo = o_ref.shape[3]
    # Static (unrolled) loop over the TH output rows of this tile; each row is
    # two MXU matmuls (kw = 0 / 1) contracting the 2*Cin kh-stacked channels.
    for r in range(th):
        xr = x_ref[0, r]               # (2*Cin, Wo+1): cheap leading-dim load
        acc = jnp.dot(w0, xr[:, :wo], preferred_element_type=jnp.float32)
        acc = acc + jnp.dot(w1, xr[:, 1:], preferred_element_type=jnp.float32)
        o_ref[0, :, r, :] = (acc + b).astype(o_ref.dtype)


def down_forward(x_nchw, weight, bias, *, compute_dtype=jnp.float32):
    """Conv2d(in_ch, out_ch, kernel_size=2, stride=2, padding=1, dilation=2).

    x_nchw : (N, Cin, H, W)    float32
    weight : (Cout, Cin, 2, 2) float32 (PyTorch layout)
    bias   : (Cout,)           float32
    returns: (N, Cout, Ho, Wo) NCHW, Ho = (H-1)//2 + 1, Wo = (W-1)//2 + 1
    """
    N, Cin, H, W = x_nchw.shape
    Cout = weight.shape[0]
    Ho = (H - 1) // 2 + 1
    Wo = (W - 1) // 2 + 1
    Hodd = H // 2
    Wodd = W // 2

    # Only the odd rows/cols of x are ever read by this conv config.
    x_odd = x_nchw[:, :, 1::2, 1::2]                              # (N, Cin, Hodd, Wodd)
    x_prep = jnp.pad(x_odd, ((0, 0), (0, 0),
                             (1, Ho - Hodd), (1, Wo - Wodd)))     # (N, Cin, Ho+1, Wo+1)
    # Stack the two kh taps along channels and put the output-row axis first so
    # the kernel's per-row access is a cheap leading-dim offset:
    #   x2[n, ho, kh*Cin + ci, c] = x_prep[n, ci, ho + kh, c]
    x2 = jnp.concatenate([x_prep[:, :, 0:Ho, :],
                          x_prep[:, :, 1:Ho + 1, :]], axis=1)     # (N, 2Cin, Ho, Wo+1)
    x2 = jnp.transpose(x2, (0, 2, 1, 3)).astype(compute_dtype)    # (N, Ho, 2Cin, Wo+1)

    # Weights: (Cout, Cin, kh, kw) -> per-kw (Cout, 2Cin), channels [kh=0 | kh=1].
    w_kw0 = jnp.concatenate([weight[:, :, 0, 0], weight[:, :, 1, 0]], axis=1)
    w_kw1 = jnp.concatenate([weight[:, :, 0, 1], weight[:, :, 1, 1]], axis=1)
    w_kw0 = w_kw0.astype(compute_dtype)
    w_kw1 = w_kw1.astype(compute_dtype)
    b2 = bias.reshape(Cout, 1).astype(jnp.float32)

    # ---- choose the row-tile TH -------------------------------------------
    # Output block last-two dims are (TH, Wo): Wo is the full dim, TH must be a
    # multiple of 8 or equal Ho. Keep double-buffered blocks under ~24 MiB so
    # the kernel fits v7x's 64 MiB VMEM (32 MiB default scoped limit).
    itemsize = jnp.dtype(compute_dtype).itemsize

    def _blk_bytes(th):
        in_blk = th * 2 * Cin * (Wo + 1) * itemsize
        out_blk = Cout * th * Wo * 4
        return 2 * (in_blk + out_blk)          # x2 for double buffering

    cands = [d for d in range(1, Ho + 1)
             if Ho % d == 0 and (d % 8 == 0 or d == Ho)]
    good = [d for d in cands if d <= 64 and _blk_bytes(d) <= (24 << 20)]
    TH = max(good) if good else min(cands)

    w_bytes = (w_kw0.size + w_kw1.size) * itemsize + b2.size * 4
    vmem_limit = int(min(48 << 20,
                         max(_blk_bytes(TH) + 2 * w_bytes + (4 << 20), 16 << 20)))

    grid = (N, Ho // TH)
    out = pl.pallas_call(
        _down_conv_kernel,
        out_shape=jax.ShapeDtypeStruct((N, Cout, Ho, Wo), jnp.float32),
        grid_spec=pltpu.PrefetchScalarGridSpec(
            num_scalar_prefetch=0,
            grid=grid,
            in_specs=[
                pl.BlockSpec((1, TH, 2 * Cin, Wo + 1), lambda n, h: (n, h, 0, 0)),
                pl.BlockSpec((Cout, 2 * Cin), lambda n, h: (0, 0)),
                pl.BlockSpec((Cout, 2 * Cin), lambda n, h: (0, 0)),
                pl.BlockSpec((Cout, 1), lambda n, h: (0, 0)),
            ],
            out_specs=pl.BlockSpec((1, Cout, TH, Wo), lambda n, h: (n, 0, h, 0)),
        ),
        compiler_params=pltpu.CompilerParams(
            dimension_semantics=("parallel", "parallel"),
            vmem_limit_bytes=vmem_limit,
        ),
        cost_estimate=pl.CostEstimate(
            flops=2 * N * Ho * Wo * (4 * Cin) * Cout,
            transcendentals=0,
            bytes_accessed=(x2.size * itemsize
                            + (w_kw0.size + w_kw1.size) * itemsize
                            + b2.size * 4
                            + N * Cout * Ho * Wo * 4),
        ),
    )(x2, w_kw0, w_kw1, b2)
    return out


def _reference_conv(x, w, b):
    # pure-JAX reference for the same Conv2d config
    y = lax.conv_general_dilated(
        x, w,
        window_strides=(2, 2),
        padding=[(1, 1), (1, 1)],
        rhs_dilation=(2, 2),
        dimension_numbers=("NCHW", "OIHW", "NCHW"),
        precision=lax.Precision.HIGHEST,
    )
    return y + b.reshape(1, -1, 1, 1)


if __name__ == "__main__":
    key = jax.random.PRNGKey(0)
    k_x, k_w, k_b = jax.random.split(key, 3)

    N, in_ch, out_ch, H, W = 2, 4, 8, 16, 16

    x = jax.random.normal(k_x, (N, in_ch, H, W), dtype=jnp.float32)

    # deterministic PyTorch-style init: U(-bound, bound), bound = 1/sqrt(fan_in)
    fan_in = in_ch * 2 * 2
    bound = 1.0 / (fan_in ** 0.5)
    weight = jax.random.uniform(k_w, (out_ch, in_ch, 2, 2),
                                minval=-bound, maxval=bound, dtype=jnp.float32)
    bias = jax.random.uniform(k_b, (out_ch,),
                              minval=-bound, maxval=bound, dtype=jnp.float32)

    fwd = jax.jit(down_forward)
    y = jax.block_until_ready(fwd(x, weight, bias))

    y_ref = jax.block_until_ready(_reference_conv(x, weight, bias))
    assert y.shape == y_ref.shape == (N, out_ch, (H - 1) // 2 + 1, (W - 1) // 2 + 1)
    err = float(jnp.max(jnp.abs(y - y_ref)))
    assert jnp.allclose(y, y_ref, atol=1e-4, rtol=1e-4), err

    print("KERNEL_OK")
</pallas_src>

<mosaic_0001>
module attributes {stable_mosaic.version = 11 : i64} {
  func.func @_down_conv_kernel(%arg0: i32, %arg1: i32, %arg2: memref<1x8x8x9xf32, #tpu.memory_space<vmem>>, %arg3: memref<8x8xf32, #tpu.memory_space<vmem>>, %arg4: memref<8x8xf32, #tpu.memory_space<vmem>>, %arg5: memref<8x1xf32, #tpu.memory_space<vmem>>, %arg6: memref<1x8x8x8xf32, #tpu.memory_space<vmem>>) attributes {dimension_semantics = [#tpu.dimension_semantics<parallel>, #tpu.dimension_semantics<parallel>], iteration_bounds = array<i64: 2, 1>, scalar_prefetch = 0 : i64, scratch_operands = 0 : i64, tpu.core_type = #tpu.core_type<tc>, window_params = [{transform_indices = @transform_0, window_bounds = array<i64: 1, 8, 8, 9>}, {pipeline_mode = #tpu.pipeline_mode<synchronous>, transform_indices = @transform_1, window_bounds = array<i64: 8, 8>}, {pipeline_mode = #tpu.pipeline_mode<synchronous>, transform_indices = @transform_2, window_bounds = array<i64: 8, 8>}, {pipeline_mode = #tpu.pipeline_mode<synchronous>, transform_indices = @transform_3, window_bounds = array<i64: 8, 1>}, {transform_indices = @transform_4, window_bounds = array<i64: 1, 8, 8, 8>}]} {
    %c0 = arith.constant 0 : index
    %c0_0 = arith.constant 0 : index
    %0 = vector.load %arg3[%c0, %c0_0] : memref<8x8xf32, #tpu.memory_space<vmem>>, vector<8x8xf32>
    %c0_1 = arith.constant 0 : index
    %c0_2 = arith.constant 0 : index
    %1 = vector.load %arg4[%c0_1, %c0_2] : memref<8x8xf32, #tpu.memory_space<vmem>>, vector<8x8xf32>
    %c0_3 = arith.constant 0 : index
    %c0_4 = arith.constant 0 : index
    %2 = vector.load %arg5[%c0_3, %c0_4] : memref<8x1xf32, #tpu.memory_space<vmem>>, vector<8x1xf32>
    %c0_5 = arith.constant 0 : index
    %c0_6 = arith.constant 0 : index
    %c0_7 = arith.constant 0 : index
    %c0_8 = arith.constant 0 : index
    %3 = vector.load %arg2[%c0_5, %c0_6, %c0_7, %c0_8] : memref<1x8x8x9xf32, #tpu.memory_space<vmem>>, vector<1x1x8x9xf32>
    %4 = vector.shape_cast %3 : vector<1x1x8x9xf32> to vector<8x9xf32>
    %5 = vector.extract_strided_slice %4 {offsets = [0, 0], sizes = [8, 8], strides = [1, 1]} : vector<8x9xf32> to vector<8x8xf32>
    %cst = arith.constant dense<0.000000e+00> : vector<8x8xf32>
    %6 = tpu.matmul %0, %5, %cst {dimension_numbers = #tpu.dot_dimension_numbers<[1], [0], [0], [1], [0, 0, 1, 1], [], []>} : vector<8x8xf32>, vector<8x8xf32>, vector<8x8xf32> -> vector<8x8xf32>
    %7 = vector.extract_strided_slice %4 {offsets = [0, 1], sizes = [8, 8], strides = [1, 1]} : vector<8x9xf32> to vector<8x8xf32>
    %cst_9 = arith.constant dense<0.000000e+00> : vector<8x8xf32>
    %8 = tpu.matmul %1, %7, %cst_9 {dimension_numbers = #tpu.dot_dimension_numbers<[1], [0], [0], [1], [0, 0, 1, 1], [], []>} : vector<8x8xf32>, vector<8x8xf32>, vector<8x8xf32> -> vector<8x8xf32>
    %9 = arith.addf %6, %8 : vector<8x8xf32>
    %10 = vector.broadcast %2 : vector<8x1xf32> to vector<8x8xf32>
    %11 = arith.addf %9, %10 : vector<8x8xf32>
    %c0_10 = arith.constant 0 : index
    %c0_11 = arith.constant 0 : index
    %c0_12 = arith.constant 0 : index
    %c0_13 = arith.constant 0 : index
    %12 = vector.load %arg6[%c0_10, %c0_11, %c0_12, %c0_13] : memref<1x8x8x8xf32, #tpu.memory_space<vmem>>, vector<1x8x1x8xf32>
    %13 = vector.shape_cast %12 : vector<1x8x1x8xf32> to vector<8x8xf32>
    %14 = vector.shape_cast %11 : vector<8x8xf32> to vector<1x8x1x8xf32>
    tpu.vector_store %arg6[%c0_10, %c0_11, %c0_12, %c0_13], %14 {strides = array<i32>} : memref<1x8x8x8xf32, #tpu.memory_space<vmem>>, vector<1x8x1x8xf32>,
    %c0_14 = arith.constant 0 : index
    %c1 = arith.constant 1 : index
    %c0_15 = arith.constant 0 : index
    %c0_16 = arith.constant 0 : index
    %15 = vector.load %arg2[%c0_14, %c1, %c0_15, %c0_16] : memref<1x8x8x9xf32, #tpu.memory_space<vmem>>, vector<1x1x8x9xf32>
    %16 = vector.shape_cast %15 : vector<1x1x8x9xf32> to vector<8x9xf32>
    %17 = vector.extract_strided_slice %16 {offsets = [0, 0], sizes = [8, 8], strides = [1, 1]} : vector<8x9xf32> to vector<8x8xf32>
    %cst_17 = arith.constant dense<0.000000e+00> : vector<8x8xf32>
    %18 = tpu.matmul %0, %17, %cst_17 {dimension_numbers = #tpu.dot_dimension_numbers<[1], [0], [0], [1], [0, 0, 1, 1], [], []>} : vector<8x8xf32>, vector<8x8xf32>, vector<8x8xf32> -> vector<8x8xf32>
    %19 = vector.extract_strided_slice %16 {offsets = [0, 1], sizes = [8, 8], strides = [1, 1]} : vector<8x9xf32> to vector<8x8xf32>
    %cst_18 = arith.constant dense<0.000000e+00> : vector<8x8xf32>
    %20 = tpu.matmul %1, %19, %cst_18 {dimension_numbers = #tpu.dot_dimension_numbers<[1], [0], [0], [1], [0, 0, 1, 1], [], []>} : vector<8x8xf32>, vector<8x8xf32>, vector<8x8xf32> -> vector<8x8xf32>
    %21 = arith.addf %18, %20 : vector<8x8xf32>
    %22 = vector.broadcast %2 : vector<8x1xf32> to vector<8x8xf32>
    %23 = arith.addf %21, %22 : vector<8x8xf32>
    %c0_19 = arith.constant 0 : index
    %c0_20 = arith.constant 0 : index
    %c1_21 = arith.constant 1 : index
    %c0_22 = arith.constant 0 : index
    %24 = vector.load %arg6[%c0_19, %c0_20, %c1_21, %c0_22] : memref<1x8x8x8xf32, #tpu.memory_space<vmem>>, vector<1x8x1x8xf32>
    %25 = vector.shape_cast %24 : vector<1x8x1x8xf32> to vector<8x8xf32>
    %26 = vector.shape_cast %23 : vector<8x8xf32> to vector<1x8x1x8xf32>
    tpu.vector_store %arg6[%c0_19, %c0_20, %c1_21, %c0_22], %26 {strides = array<i32>} : memref<1x8x8x8xf32, #tpu.memory_space<vmem>>, vector<1x8x1x8xf32>,
    %c0_23 = arith.constant 0 : index
    %c2 = arith.constant 2 : index
    %c0_24 = arith.constant 0 : index
    %c0_25 = arith.constant 0 : index
    %27 = vector.load %arg2[%c0_23, %c2, %c0_24, %c0_25] : memref<1x8x8x9xf32, #tpu.memory_space<vmem>>, vector<1x1x8x9xf32>
    %28 = vector.shape_cast %27 : vector<1x1x8x9xf32> to vector<8x9xf32>
    %29 = vector.extract_strided_slice %28 {offsets = [0, 0], sizes = [8, 8], strides = [1, 1]} : vector<8x9xf32> to vector<8x8xf32>
    %cst_26 = arith.constant dense<0.000000e+00> : vector<8x8xf32>
    %30 = tpu.matmul %0, %29, %cst_26 {dimension_numbers = #tpu.dot_dimension_numbers<[1], [0], [0], [1], [0, 0, 1, 1], [], []>} : vector<8x8xf32>, vector<8x8xf32>, vector<8x8xf32> -> vector<8x8xf32>
    %31 = vector.extract_strided_slice %28 {offsets = [0, 1], sizes = [8, 8], strides = [1, 1]} : vector<8x9xf32> to vector<8x8xf32>
    %cst_27 = arith.constant dense<0.000000e+00> : vector<8x8xf32>
    %32 = tpu.matmul %1, %31, %cst_27 {dimension_numbers = #tpu.dot_dimension_numbers<[1], [0], [0], [1], [0, 0, 1, 1], [], []>} : vector<8x8xf32>, vector<8x8xf32>, vector<8x8xf32> -> vector<8x8xf32>
    %33 = arith.addf %30, %32 : vector<8x8xf32>
    %34 = vector.broadcast %2 : vector<8x1xf32> to vector<8x8xf32>
    %35 = arith.addf %33, %34 : vector<8x8xf32>
    %c0_28 = arith.constant 0 : index
    %c0_29 = arith.constant 0 : index
    %c2_30 = arith.constant 2 : index
    %c0_31 = arith.constant 0 : index
    %36 = vector.load %arg6[%c0_28, %c0_29, %c2_30, %c0_31] : memref<1x8x8x8xf32, #tpu.memory_space<vmem>>, vector<1x8x1x8xf32>
    %37 = vector.shape_cast %36 : vector<1x8x1x8xf32> to vector<8x8xf32>
    %38 = vector.shape_cast %35 : vector<8x8xf32> to vector<1x8x1x8xf32>
    tpu.vector_store %arg6[%c0_28, %c0_29, %c2_30, %c0_31], %38 {strides = array<i32>} : memref<1x8x8x8xf32, #tpu.memory_space<vmem>>, vector<1x8x1x8xf32>,
    %c0_32 = arith.constant 0 : index
    %c3 = arith.constant 3 : index
    %c0_33 = arith.constant 0 : index
    %c0_34 = arith.constant 0 : index
    %39 = vector.load %arg2[%c0_32, %c3, %c0_33, %c0_34] : memref<1x8x8x9xf32, #tpu.memory_space<vmem>>, vector<1x1x8x9xf32>
    %40 = vector.shape_cast %39 : vector<1x1x8x9xf32> to vector<8x9xf32>
    %41 = vector.extract_strided_slice %40 {offsets = [0, 0], sizes = [8, 8], strides = [1, 1]} : vector<8x9xf32> to vector<8x8xf32>
    %cst_35 = arith.constant dense<0.000000e+00> : vector<8x8xf32>
    %42 = tpu.matmul %0, %41, %cst_35 {dimension_numbers = #tpu.dot_dimension_numbers<[1], [0], [0], [1], [0, 0, 1, 1], [], []>} : vector<8x8xf32>, vector<8x8xf32>, vector<8x8xf32> -> vector<8x8xf32>
    %43 = vector.extract_strided_slice %40 {offsets = [0, 1], sizes = [8, 8], strides = [1, 1]} : vector<8x9xf32> to vector<8x8xf32>
    %cst_36 = arith.constant dense<0.000000e+00> : vector<8x8xf32>
    %44 = tpu.matmul %1, %43, %cst_36 {dimension_numbers = #tpu.dot_dimension_numbers<[1], [0], [0], [1], [0, 0, 1, 1], [], []>} : vector<8x8xf32>, vector<8x8xf32>, vector<8x8xf32> -> vector<8x8xf32>
    %45 = arith.addf %42, %44 : vector<8x8xf32>
    %46 = vector.broadcast %2 : vector<8x1xf32> to vector<8x8xf32>
    %47 = arith.addf %45, %46 : vector<8x8xf32>
    %c0_37 = arith.constant 0 : index
    %c0_38 = arith.constant 0 : index
    %c3_39 = arith.constant 3 : index
    %c0_40 = arith.constant 0 : index
    %48 = vector.load %arg6[%c0_37, %c0_38, %c3_39, %c0_40] : memref<1x8x8x8xf32, #tpu.memory_space<vmem>>, vector<1x8x1x8xf32>
    %49 = vector.shape_cast %48 : vector<1x8x1x8xf32> to vector<8x8xf32>
    %50 = vector.shape_cast %47 : vector<8x8xf32> to vector<1x8x1x8xf32>
    tpu.vector_store %arg6[%c0_37, %c0_38, %c3_39, %c0_40], %50 {strides = array<i32>} : memref<1x8x8x8xf32, #tpu.memory_space<vmem>>, vector<1x8x1x8xf32>,
    %c0_41 = arith.constant 0 : index
    %c4 = arith.constant 4 : index
    %c0_42 = arith.constant 0 : index
    %c0_43 = arith.constant 0 : index
    %51 = vector.load %arg2[%c0_41, %c4, %c0_42, %c0_43] : memref<1x8x8x9xf32, #tpu.memory_space<vmem>>, vector<1x1x8x9xf32>
    %52 = vector.shape_cast %51 : vector<1x1x8x9xf32> to vector<8x9xf32>
    %53 = vector.extract_strided_slice %52 {offsets = [0, 0], sizes = [8, 8], strides = [1, 1]} : vector<8x9xf32> to vector<8x8xf32>
    %cst_44 = arith.constant dense<0.000000e+00> : vector<8x8xf32>
    %54 = tpu.matmul %0, %53, %cst_44 {dimension_numbers = #tpu.dot_dimension_numbers<[1], [0], [0], [1], [0, 0, 1, 1], [], []>} : vector<8x8xf32>, vector<8x8xf32>, vector<8x8xf32> -> vector<8x8xf32>
    %55 = vector.extract_strided_slice %52 {offsets = [0, 1], sizes = [8, 8], strides = [1, 1]} : vector<8x9xf32> to vector<8x8xf32>
    %cst_45 = arith.constant dense<0.000000e+00> : vector<8x8xf32>
    %56 = tpu.matmul %1, %55, %cst_45 {dimension_numbers = #tpu.dot_dimension_numbers<[1], [0], [0], [1], [0, 0, 1, 1], [], []>} : vector<8x8xf32>, vector<8x8xf32>, vector<8x8xf32> -> vector<8x8xf32>
    %57 = arith.addf %54, %56 : vector<8x8xf32>
    %58 = vector.broadcast %2 : vector<8x1xf32> to vector<8x8xf32>
    %59 = arith.addf %57, %58 : vector<8x8xf32>
    %c0_46 = arith.constant 0 : index
    %c0_47 = arith.constant 0 : index
    %c4_48 = arith.constant 4 : index
    %c0_49 = arith.constant 0 : index
    %60 = vector.load %arg6[%c0_46, %c0_47, %c4_48, %c0_49] : memref<1x8x8x8xf32, #tpu.memory_space<vmem>>, vector<1x8x1x8xf32>
    %61 = vector.shape_cast %60 : vector<1x8x1x8xf32> to vector<8x8xf32>
    %62 = vector.shape_cast %59 : vector<8x8xf32> to vector<1x8x1x8xf32>
    tpu.vector_store %arg6[%c0_46, %c0_47, %c4_48, %c0_49], %62 {strides = array<i32>} : memref<1x8x8x8xf32, #tpu.memory_space<vmem>>, vector<1x8x1x8xf32>,
    %c0_50 = arith.constant 0 : index
    %c5 = arith.constant 5 : index
    %c0_51 = arith.constant 0 : index
    %c0_52 = arith.constant 0 : index
    %63 = vector.load %arg2[%c0_50, %c5, %c0_51, %c0_52] : memref<1x8x8x9xf32, #tpu.memory_space<vmem>>, vector<1x1x8x9xf32>
    %64 = vector.shape_cast %63 : vector<1x1x8x9xf32> to vector<8x9xf32>
    %65 = vector.extract_strided_slice %64 {offsets = [0, 0], sizes = [8, 8], strides = [1, 1]} : vector<8x9xf32> to vector<8x8xf32>
    %cst_53 = arith.constant dense<0.000000e+00> : vector<8x8xf32>
    %66 = tpu.matmul %0, %65, %cst_53 {dimension_numbers = #tpu.dot_dimension_numbers<[1], [0], [0], [1], [0, 0, 1, 1], [], []>} : vector<8x8xf32>, vector<8x8xf32>, vector<8x8xf32> -> vector<8x8xf32>
    %67 = vector.extract_strided_slice %64 {offsets = [0, 1], sizes = [8, 8], strides = [1, 1]} : vector<8x9xf32> to vector<8x8xf32>
    %cst_54 = arith.constant dense<0.000000e+00> : vector<8x8xf32>
    %68 = tpu.matmul %1, %67, %cst_54 {dimension_numbers = #tpu.dot_dimension_numbers<[1], [0], [0], [1], [0, 0, 1, 1], [], []>} : vector<8x8xf32>, vector<8x8xf32>, vector<8x8xf32> -> vector<8x8xf32>
    %69 = arith.addf %66, %68 : vector<8x8xf32>
    %70 = vector.broadcast %2 : vector<8x1xf32> to vector<8x8xf32>
    %71 = arith.addf %69, %70 : vector<8x8xf32>
    %c0_55 = arith.constant 0 : index
    %c0_56 = arith.constant 0 : index
    %c5_57 = arith.constant 5 : index
    %c0_58 = arith.constant 0 : index
    %72 = vector.load %arg6[%c0_55, %c0_56, %c5_57, %c0_58] : memref<1x8x8x8xf32, #tpu.memory_space<vmem>>, vector<1x8x1x8xf32>
    %73 = vector.shape_cast %72 : vector<1x8x1x8xf32> to vector<8x8xf32>
    %74 = vector.shape_cast %71 : vector<8x8xf32> to vector<1x8x1x8xf32>
    tpu.vector_store %arg6[%c0_55, %c0_56, %c5_57, %c0_58], %74 {strides = array<i32>} : memref<1x8x8x8xf32, #tpu.memory_space<vmem>>, vector<1x8x1x8xf32>,
    %c0_59 = arith.constant 0 : index
    %c6 = arith.constant 6 : index
    %c0_60 = arith.constant 0 : index
    %c0_61 = arith.constant 0 : index
    %75 = vector.load %arg2[%c0_59, %c6, %c0_60, %c0_61] : memref<1x8x8x9xf32, #tpu.memory_space<vmem>>, vector<1x1x8x9xf32>
    %76 = vector.shape_cast %75 : vector<1x1x8x9xf32> to vector<8x9xf32>
    %77 = vector.extract_strided_slice %76 {offsets = [0, 0], sizes = [8, 8], strides = [1, 1]} : vector<8x9xf32> to vector<8x8xf32>
    %cst_62 = arith.constant dense<0.000000e+00> : vector<8x8xf32>
    %78 = tpu.matmul %0, %77, %cst_62 {dimension_numbers = #tpu.dot_dimension_numbers<[1], [0], [0], [1], [0, 0, 1, 1], [], []>} : vector<8x8xf32>, vector<8x8xf32>, vector<8x8xf32> -> vector<8x8xf32>
    %79 = vector.extract_strided_slice %76 {offsets = [0, 1], sizes = [8, 8], strides = [1, 1]} : vector<8x9xf32> to vector<8x8xf32>
    %cst_63 = arith.constant dense<0.000000e+00> : vector<8x8xf32>
    %80 = tpu.matmul %1, %79, %cst_63 {dimension_numbers = #tpu.dot_dimension_numbers<[1], [0], [0], [1], [0, 0, 1, 1], [], []>} : vector<8x8xf32>, vector<8x8xf32>, vector<8x8xf32> -> vector<8x8xf32>
    %81 = arith.addf %78, %80 : vector<8x8xf32>
    %82 = vector.broadcast %2 : vector<8x1xf32> to vector<8x8xf32>
    %83 = arith.addf %81, %82 : vector<8x8xf32>
    %c0_64 = arith.constant 0 : index
    %c0_65 = arith.constant 0 : index
    %c6_66 = arith.constant 6 : index
    %c0_67 = arith.constant 0 : index
    %84 = vector.load %arg6[%c0_64, %c0_65, %c6_66, %c0_67] : memref<1x8x8x8xf32, #tpu.memory_space<vmem>>, vector<1x8x1x8xf32>
    %85 = vector.shape_cast %84 : vector<1x8x1x8xf32> to vector<8x8xf32>
    %86 = vector.shape_cast %83 : vector<8x8xf32> to vector<1x8x1x8xf32>
    tpu.vector_store %arg6[%c0_64, %c0_65, %c6_66, %c0_67], %86 {strides = array<i32>} : memref<1x8x8x8xf32, #tpu.memory_space<vmem>>, vector<1x8x1x8xf32>,
    %c0_68 = arith.constant 0 : index
    %c7 = arith.constant 7 : index
    %c0_69 = arith.constant 0 : index
    %c0_70 = arith.constant 0 : index
    %87 = vector.load %arg2[%c0_68, %c7, %c0_69, %c0_70] : memref<1x8x8x9xf32, #tpu.memory_space<vmem>>, vector<1x1x8x9xf32>
    %88 = vector.shape_cast %87 : vector<1x1x8x9xf32> to vector<8x9xf32>
    %89 = vector.extract_strided_slice %88 {offsets = [0, 0], sizes = [8, 8], strides = [1, 1]} : vector<8x9xf32> to vector<8x8xf32>
    %cst_71 = arith.constant dense<0.000000e+00> : vector<8x8xf32>
    %90 = tpu.matmul %0, %89, %cst_71 {dimension_numbers = #tpu.dot_dimension_numbers<[1], [0], [0], [1], [0, 0, 1, 1], [], []>} : vector<8x8xf32>, vector<8x8xf32>, vector<8x8xf32> -> vector<8x8xf32>
    %91 = vector.extract_strided_slice %88 {offsets = [0, 1], sizes = [8, 8], strides = [1, 1]} : vector<8x9xf32> to vector<8x8xf32>
    %cst_72 = arith.constant dense<0.000000e+00> : vector<8x8xf32>
    %92 = tpu.matmul %1, %91, %cst_72 {dimension_numbers = #tpu.dot_dimension_numbers<[1], [0], [0], [1], [0, 0, 1, 1], [], []>} : vector<8x8xf32>, vector<8x8xf32>, vector<8x8xf32> -> vector<8x8xf32>
    %93 = arith.addf %90, %92 : vector<8x8xf32>
    %94 = vector.broadcast %2 : vector<8x1xf32> to vector<8x8xf32>
    %95 = arith.addf %93, %94 : vector<8x8xf32>
    %c0_73 = arith.constant 0 : index
    %c0_74 = arith.constant 0 : index
    %c7_75 = arith.constant 7 : index
    %c0_76 = arith.constant 0 : index
    %96 = vector.load %arg6[%c0_73, %c0_74, %c7_75, %c0_76] : memref<1x8x8x8xf32, #tpu.memory_space<vmem>>, vector<1x8x1x8xf32>
    %97 = vector.shape_cast %96 : vector<1x8x1x8xf32> to vector<8x8xf32>
    %98 = vector.shape_cast %95 : vector<8x8xf32> to vector<1x8x1x8xf32>
    tpu.vector_store %arg6[%c0_73, %c0_74, %c7_75, %c0_76], %98 {strides = array<i32>} : memref<1x8x8x8xf32, #tpu.memory_space<vmem>>, vector<1x8x1x8xf32>,
    return
  }
  func.func @transform_0(%arg0: i32, %arg1: i32) -> (i32, i32, i32, i32) {
    %c0_i32 = arith.constant 0 : i32
    %c0_i32_0 = arith.constant 0 : i32
    %c0_i32_1 = arith.constant 0 : i32
    return %arg0, %arg1, %c0_i32, %c0_i32_0 : i32, i32, i32, i32
  }
  func.func @transform_1(%arg0: i32, %arg1: i32) -> (i32, i32) {
    %c0_i32 = arith.constant 0 : i32
    %c0_i32_0 = arith.constant 0 : i32
    %c0_i32_1 = arith.constant 0 : i32
    return %c0_i32, %c0_i32_0 : i32, i32
  }
  func.func @transform_2(%arg0: i32, %arg1: i32) -> (i32, i32) {
    %c0_i32 = arith.constant 0 : i32
    %c0_i32_0 = arith.constant 0 : i32
    %c0_i32_1 = arith.constant 0 : i32
    return %c0_i32, %c0_i32_0 : i32, i32
  }
  func.func @transform_3(%arg0: i32, %arg1: i32) -> (i32, i32) {
    %c0_i32 = arith.constant 0 : i32
    %c0_i32_0 = arith.constant 0 : i32
    %c0_i32_1 = arith.constant 0 : i32
    return %c0_i32, %c0_i32_0 : i32, i32
  }
  func.func @transform_4(%arg0: i32, %arg1: i32) -> (i32, i32, i32, i32) {
    %c0_i32 = arith.constant 0 : i32
    %c0_i32_0 = arith.constant 0 : i32
    %c0_i32_1 = arith.constant 0 : i32
    return %arg0, %c0_i32, %arg1, %c0_i32_0 : i32, i32, i32, i32
  }
}

</mosaic_0001>

<bundles_post_ra>
// kernel: down_forward.1
= control target key start
LH: loop header
LB: loop body
LE: loop exit
PB: predicated region body
PF: predicated region fallthrough
CT: control target
= control target key end

     0   :  { %9 = vsyncpa [#allocation3], 0  ;;  %s2759_s0 = inlined_call_operand.vmem [shape: f32[2,8,8,9], index: 0, kind: input, shape index: {}]   ;;  %s2760_s1 = inlined_call_operand.vmem [shape: f32[8,8], index: 1, kind: input, shape index: {}]   ;;  %s2761_s2 = inlined_call_operand.vmem [shape: f32[8,8], index: 2, kind: input, shape index: {}]   ;;  %s2762_s3 = inlined_call_operand.vmem [shape: f32[8,1], index: 3, kind: input, shape index: {}]   ;;  %s2763_s4 = inlined_call_operand.hbm [shape: f32[2,8,8,8], index: 4, kind: output, shape index: {}]  }
   0x1   :  { %11 = vsyncpa [#allocation3 + $0x1], 0  ;;  %s2364_s15 = smov 0   ;;  %s2366_s16 = smov 0  }
   0x2   :  { %s2368_s17 = smov 0   ;;  %s2370_s18 = smov 0  }
   0x3   :  { %s2372_s19 = smov 0   ;;  %s2374_s20 = smov 0  }
   0x4 LB: > { %s2038_s21 = sadd.s32 4294967295, %s2329_s20   ;;  %s2039_s22 = sadd.s32 4294967294, %s2329_s20   ;;  %s2329_s20 = sphi %s2374_s20, %s17_s20   ;;  %s2325_s19 = sphi %s2372_s19, %s2770_s19   ;;  %s2321_s18 = sphi %s2370_s18, %s2769_s18   ;;  %s2317_s17 = sphi %s2368_s17, %s2768_s17   ;;  %s2313_s16 = sphi %s2366_s16, %s2767_s16   ;;  %s2309_s15 = sphi %s2364_s15, %s2766_s15  }
   0x5   : > { %s29_s23 = sadd.s32 1, %s2325_s19  ;;  %s129_s24 = sadd.s32 1, %s2317_s17 }
   0x6   : > { %p31_p0 = scmp.ge.s32.totalorder %s29_s23, 2  ;;  %p139_p1 = scmp.ne.s32.totalorder %s2317_s17, %s2313_s16 }
   0x7   : > { %p140_p2 = scmp.eq.s32.totalorder %s2038_s21, 1  ;;  %p145_p3 = scmp.ne.s32.totalorder %s2313_s16, %s2309_s15 }
   0x8   : > { %s2772_s23 = smov (%p31_p0, %s29_s23), 0  ;;  %p146_p5 = scmp.eq.s32.totalorder %s2039_s22, 1 }
   0x9   : > { %p2404_p4 = por %p140_p2, %p139_p1  ;;  %s124_s26 = ssub.s32 %s2325_s19, %s2772_s23 }
   0xa   : > { %p2042_p6 = scmp.ge.s32.totalorder %s2329_s20, 1  ;;  %p127_p7 = scmp.eq.s32.totalorder %s124_s26, 0 }
   0xb   : > { %p2411_p8 = por %p146_p5, %p145_p3  ;;  %p186_p9 = scmp.lt.s32.totalorder %s2329_s20, 3 }
   0xc   : > { %s2417_s28 = scalar_select %p127_p7, %s2317_s17, %s129_s24  }
   0xd   : > { %p187_p10 = pnand %p2042_p6, %p186_p9 }
   0xe   : > { %p217_p11 = scmp.lt.s32.totalorder (!%p187_p10), %s2321_s18, 1  ;;  %v2331_v0 = vmov (!%p187_p10), 0.0   ;;  %vm2332_vm0 = vmmov (!%p187_p10), 0   ;;  %vm234_vm1 = vcmask (!%p187_p10), 64512   ;;  %v226_v3 = vld [vmem:[%s2760_s1] sm:$0xff] (!%p187_p10)  ;;  %s2333_s10 = smov (!%p187_p10), 127   ;;  %v392_v39 = vlaneseq (!%p187_p10) }
   0xf   : > { %190 = sbr.rel (%p187_p10) target bundleno = 415 (0x19f), region = 36  ;;  %2108 = vmatprep.subr.mxu0 (!%p187_p10), %v2331_v0  ;;  %2113 = vmatprep.subr.mxu1 (!%p187_p10), %v2331_v0  ;;  %v228_v10 = vld [vmem:[%s2762_s3] sm:$0xff] (!%p187_p10)  ;;  %v2334_v11 = vmov (!%p187_p10), 0   ;;  %v2335_v37 = vmov (!%p187_p10), 1966171168   ;;  %s213_s21 = sand.u32 (!%p187_p10), 1, %s2313_s16  }
  0x10   : > { %2110 = vmatprep.mubr.msk.f32.mxu0 (!%p187_p10), %vm2332_vm0, %v2331_v0  ;;  %2115 = vmatprep.mubr.msk.f32.mxu1 (!%p187_p10), %vm2332_vm0, %v2331_v0  ;;  %v227_v12 = vld [vmem:[%s2761_s2] sm:$0xff] (!%p187_p10)  ;;  %v390_v38 = vunpack.c.l.s4 (!%p187_p10), %v2335_v37  ;;  %v393_v41 = vshrl.u32 (!%p187_p10), %v392_v39, 7  ;;  %s2043_s22 = sshll.u32 (!%p187_p10), %s213_s21, 6  ;;  %vm445_vm2 = vcmask (!%p187_p10), 57344   ;;  %s2075_s26 = sshll.u32 (!%p187_p10), %s2321_s18, 10 }
  0x11   : > { %2250 = vset.pattern.permute.xlu0 (!%p187_p10), %v2334_v11  ;;  %s2519_s24 = scalar_lea.vmem (!%p187_p10), [#allocation2], %s2043_s22  ;;  %s2699_s5 = scalar_lea.hbm (!%p187_p10), %s2763_s4, %s2075_s26 }
  0x12   : > { %v391_v40 = vunpack.c.0.s8 (!%p187_p10), %v390_v38  ;;  %s2713_s6 = scalar_lea.sflag (!%p187_p10), [#allocation3], %s213_s21  ;;  %s2336_s8 = smov (!%p187_p10), [#allocation2]  }
  0x13   : > { %s2255_s9 = sshll.u32 (!%p187_p10), %s2336_s8, 4  ;;  %s2256_s9 = int_to_ptr.vmem [resolvable:$false] %s2255_s9 }
  0x14   : > { %v2508_v46 = vsub.s32 (!%p187_p10), %v391_v40, %v393_v41 }
  0x16   : > { %s218_s29 = scalar_select %p217_p11, %s2321_s18, 1 }
  0x18   : > { %s2074_s30 = sshll.u32 %s218_s29, 6  ;;  %s1960_s29 = sshll.u32 %s2519_s24, 4  ;;  %s2701_s29 = int_to_ptr.vmem [resolvable:$true] %s1960_s29 }
  0x19   : > { %s224_s7 = scalar_lea.vmem %s2759_s0, %s2074_s30  ;;  %p2258_p1 = scmp.lt.s32.totalorder %s2701_s29, %s2256_s9 }
  0x1a   : > { %v229_v1 = vld [vmem:[%s224_s7] sm:$0xff]  ;;  %v2051_v2 = vld [vmem:[%s224_s7 + $0x10] sm:$0xff]  ;;  %v2048_v4 = vld [vmem:[%s224_s7 + $0x8] sm:$0xff] }
  0x1b   : > { %231 = vrot.lane.b32.xlu0 %v229_v1, %s2333_s10  ;;  %670 = vrot.lane.b32.xlu1 %v2051_v2, %s2333_s10  ;;  %v2054_v5 = vld [vmem:[%s224_s7 + $0x18] sm:$0xff]  ;;  %v2057_v6 = vld [vmem:[%s224_s7 + $0x20] sm:$0xff] }
  0x1c   : > { %2114 = vmatpush3.msra.mxu1 %v229_v1  ;;  %v2060_v7 = vld [vmem:[%s224_s7 + $0x28] sm:$0xff]  ;;  %v2063_v8 = vld [vmem:[%s224_s7 + $0x30] sm:$0xff]  ;;  %v2066_v9 = vld [vmem:[%s224_s7 + $0x38] sm:$0xff]  ;;  %s2251_s7 = scalar_lea.vmem %s2701_s29, 1024 }
  0x1d   : > { %2116 = vmatmul.mubr.msk.f32.vlgmr.msra.gmra.mrb[0].mxu1 %vm234_vm1, %v226_v3  ;;  %2123 = vmatprep.subr.mxu1 %v2331_v0  ;;  %p2252_p12 = scmp.ne.s32.totalorder %s2701_s29, %s2251_s7 }
  0x1e   : > { %2124 = vmatpush3.msra.mxu1 %v2048_v4  ;;  %2125 = vmatprep.mubr.msk.f32.mxu1 %vm2332_vm0, %v2331_v0 }
  0x1f   : > { %457 = vrot.lane.b32.xlu0 %v2048_v4, %s2333_s10  ;;  %883 = vrot.lane.b32.xlu1 %v2054_v5, %s2333_s10  ;;  %p2253_p13 = pnand %p2252_p12, %p2404_p4 }
  0x20   : > { %2133 = vmatprep.subr.mxu1 %v2331_v0 }
  0x21   : > { %2126 = vmatmul.mubr.msk.f32.vlgmr.msra.gmra.mrb[2].mxu1 %vm234_vm1, %v226_v3  ;;  %p2254_p0 = pneg %p2253_p13 }
  0x22   : > { %2134 = vmatpush3.msra.mxu1 %v2051_v2  ;;  %2135 = vmatprep.mubr.msk.f32.mxu1 %vm2332_vm0, %v2331_v0 }
  0x23   : > { %1096 = vrot.lane.b32.xlu0 %v2057_v6, %s2333_s10  ;;  %1309 = vrot.lane.b32.xlu1 %v2060_v7, %s2333_s10 }
  0x24   : > { %2143 = vmatprep.subr.mxu1 %v2331_v0 }
  0x25   : > { %2136 = vmatmul.mubr.msk.f32.vlgmr.msra.gmra.mrb[4].mxu1 %vm234_vm1, %v226_v3 }
  0x26   : > { %2144 = vmatpush3.msra.mxu1 %v2054_v5  ;;  %2145 = vmatprep.mubr.msk.f32.mxu1 %vm2332_vm0, %v2331_v0 }
  0x27   : > { %1522 = vrot.lane.b32.xlu0 %v2063_v8, %s2333_s10  ;;  %1735 = vrot.lane.b32.xlu1 %v2066_v9, %s2333_s10  ;;  %s2257_s10 = scalar_lea.vmem %s2256_s9, 2048 }
  0x28   : > { %2153 = vmatprep.subr.mxu1 %v2331_v0  ;;  %p2259_p2 = scmp.lt.s32.totalorder %s2257_s10, %s2251_s7 }
  0x29   : > { %2146 = vmatmul.mubr.msk.f32.vlgmr.msra.gmra.mrb[6].mxu1 %vm234_vm1, %v226_v3 }
  0x2a   : > { %2154 = vmatpush3.msra.mxu1 %v2057_v6  ;;  %2155 = vmatprep.mubr.msk.f32.mxu1 %vm2332_vm0, %v2331_v0  ;;  %p2260_p3 = por %p2259_p2, %p2258_p1 }
  0x2b   : > { %2163 = vmatprep.subr.mxu1 %v2331_v0  ;;  %383 = vperm.xlu0 %2250, %v228_v10  }
  0x2c   : > { %p2261_p5 = pnand %p2260_p3, %p2254_p0 }
  0x2d   : > { %2156 = vmatmul.mubr.msk.f32.vlgmr.msra.gmra.mrb[8].mxu1 %vm234_vm1, %v226_v3 }
  0x2e   : > { %2164 = vmatpush3.msra.mxu1 %v2060_v7  ;;  %2165 = vmatprep.mubr.msk.f32.mxu1 %vm2332_vm0, %v2331_v0 }
  0x2f   : > { %2173 = vmatprep.subr.mxu1 %v2331_v0 }
  0x31   : > { %2166 = vmatmul.mubr.msk.f32.vlgmr.msra.gmra.mrb[10].mxu1 %vm234_vm1, %v226_v3 }
  0x32   : > { %2174 = vmatpush3.msra.mxu1 %v2063_v8  ;;  %2175 = vmatprep.mubr.msk.f32.mxu1 %vm2332_vm0, %v2331_v0 }
  0x33   : > { %2183 = vmatprep.subr.mxu1 %v2331_v0 }
  0x35   : > { %2176 = vmatmul.mubr.msk.f32.vlgmr.msra.gmra.mrb[12].mxu1 %vm234_vm1, %v226_v3 }
  0x36   : > { %2184 = vmatpush3.msra.mxu1 %v2066_v9  ;;  %2185 = vmatprep.mubr.msk.f32.mxu1 %vm2332_vm0, %v2331_v0 }
  0x39   : > { %2186 = vmatmul.mubr.msk.f32.vlgmr.msra.gmra.mrb[14].mxu1 %vm234_vm1, %v226_v3 }
  0x8d   : > { %v232_v13 = vpop.permute.xlu0 %231  ;;  %v671_v14 = vpop.permute.xlu1 %670 }
  0x8e   : > { %2109 = vmatpush3.msra.mxu0 %v232_v13 }
  0x8f   : > { %2111 = vmatmul.mubr.msk.f32.vlgmr.msra.gmra.mrb[0].mxu0 %vm234_vm1, %v227_v12  ;;  %2118 = vmatprep.subr.mxu0 %v2331_v0 }
  0x90   : > { %2120 = vmatprep.mubr.msk.f32.mxu0 %vm2332_vm0, %v2331_v0 }
  0x91   : > { %v458_v15 = vpop.permute.xlu0 %457  ;;  %v884_v16 = vpop.permute.xlu1 %883 }
  0x92   : > { %2119 = vmatpush3.msra.mxu0 %v458_v15 }
  0x93   : > { %2121 = vmatmul.mubr.msk.f32.vlgmr.msra.gmra.mrb[2].mxu0 %vm234_vm1, %v227_v12  ;;  %2128 = vmatprep.subr.mxu0 %v2331_v0 }
  0x94   : > { %2129 = vmatpush3.msra.mxu0 %v671_v14  ;;  %2130 = vmatprep.mubr.msk.f32.mxu0 %vm2332_vm0, %v2331_v0 }
  0x95   : > { %2138 = vmatprep.subr.mxu0 %v2331_v0  ;;  %v1097_v17 = vpop.permute.xlu0 %1096  ;;  %v1310_v18 = vpop.permute.xlu1 %1309 }
  0x97   : > { %2131 = vmatmul.mubr.msk.f32.vlgmr.msra.gmra.mrb[4].mxu0 %vm234_vm1, %v227_v12 }
  0x98   : > { %2139 = vmatpush3.msra.mxu0 %v884_v16  ;;  %2140 = vmatprep.mubr.msk.f32.mxu0 %vm2332_vm0, %v2331_v0 }
  0x99   : > { %2148 = vmatprep.subr.mxu0 %v2331_v0  ;;  %v1523_v19 = vpop.permute.xlu0 %1522  ;;  %v1736_v20 = vpop.permute.xlu1 %1735 }
  0x9b   : > { %2141 = vmatmul.mubr.msk.f32.vlgmr.msra.gmra.mrb[6].mxu0 %vm234_vm1, %v227_v12 }
  0x9c   : > { %2149 = vmatpush3.msra.mxu0 %v1097_v17  ;;  %2150 = vmatprep.mubr.msk.f32.mxu0 %vm2332_vm0, %v2331_v0 }
  0x9d   : > { %2158 = vmatprep.subr.mxu0 %v2331_v0 }
  0x9f   : > { %2151 = vmatmul.mubr.msk.f32.vlgmr.msra.gmra.mrb[8].mxu0 %vm234_vm1, %v227_v12 }
  0xa0   : > { %2159 = vmatpush3.msra.mxu0 %v1310_v18  ;;  %2160 = vmatprep.mubr.msk.f32.mxu0 %vm2332_vm0, %v2331_v0 }
  0xa1   : > { %2168 = vmatprep.subr.mxu0 %v2331_v0 }
  0xa3   : > { %2161 = vmatmul.mubr.msk.f32.vlgmr.msra.gmra.mrb[10].mxu0 %vm234_vm1, %v227_v12 }
  0xa4   : > { %2169 = vmatpush3.msra.mxu0 %v1523_v19  ;;  %2170 = vmatprep.mubr.msk.f32.mxu0 %vm2332_vm0, %v2331_v0 }
  0xa5   : > { %2178 = vmatprep.subr.mxu0 %v2331_v0 }
  0xa7   : > { %2171 = vmatmul.mubr.msk.f32.vlgmr.msra.gmra.mrb[12].mxu0 %vm234_vm1, %v227_v12 }
  0xa8   : > { %2179 = vmatpush3.msra.mxu0 %v1736_v20  ;;  %2180 = vmatprep.mubr.msk.f32.mxu0 %vm2332_vm0, %v2331_v0 }
  0xaa   : > { %v2505_v43 = vpop.permute.xlu0 %383 }
  0xab   : > { %2181 = vmatmul.mubr.msk.f32.vlgmr.msra.gmra.mrb[14].mxu0 %vm234_vm1, %v227_v12 }
  0xf0   : > { %v377_v21 = vpop.f32.mrb[0].mxu1 }
  0xf1   : > { %v2117_v22 = vpop.f32.mrb[1].mxu1 }
  0xf4   : > { %v596_v23 = vpop.f32.mrb[2].mxu1 }
  0xf5   : > { %v2127_v24 = vpop.f32.mrb[3].mxu1 }
  0xf8   : > { %v809_v25 = vpop.f32.mrb[4].mxu1 }
  0xf9   : > { %v2137_v26 = vpop.f32.mrb[5].mxu1 }
  0xfc   : > { %v1022_v27 = vpop.f32.mrb[6].mxu1 }
  0xfd   : > { %v2147_v28 = vpop.f32.mrb[7].mxu1 }
 0x100   : > { %v2497_v29 = vpop.f32.mrb[8].mxu1 }
 0x101   : > { %v2157_v30 = vpop.f32.mrb[9].mxu1 }
 0x104   : > { %v2499_v31 = vpop.f32.mrb[10].mxu1 }
 0x105   : > { %v2167_v32 = vpop.f32.mrb[11].mxu1 }
 0x108   : > { %v2501_v33 = vpop.f32.mrb[12].mxu1 }
 0x109   : > { %v2177_v34 = vpop.f32.mrb[13].mxu1 }
 0x10c   : > { %v2503_v35 = vpop.f32.mrb[14].mxu1 }
 0x10d   : > { %v2187_v36 = vpop.f32.mrb[15].mxu1 }
 0x162   : > { %v304_v42 = vpop.f32.mrb[0].mxu0 }
 0x163   : > { %v378_v44 = vadd.f32 %v377_v21, %v304_v42  ;;  %v2112_v45 = vpop.f32.mrb[1].mxu0 }
 0x165   : > { %v386_v47 = vadd.f32 %v2505_v43, %v378_v44 }
 0x166   : > { %v526_v48 = vpop.f32.mrb[2].mxu0 }
 0x167   : > { %v388_v49 = vcombine.high %v386_v47, %v386_v47  ;;  %v395_v50 = vrot.slane %v386_v47, %v2508_v46  ;;  %v597_v51 = vadd.f32 %v596_v23, %v526_v48  ;;  %v2122_v52 = vpop.f32.mrb[3].mxu0 }
 0x169   : > { %v402_v53 = vrot.slane %v388_v49, %v2508_v46  ;;  %v403_v54 = vcombine.high %v395_v50, %v395_v50  ;;  %v411_v55 = vrot.slane %v395_v50, %v2508_v46  ;;  %v600_v56 = vadd.f32 %v597_v51, %v2505_v43 }
 0x16a   : > { %v739_v57 = vpop.f32.mrb[4].mxu0 }
 0x16b   : > { %v404_v58 = vcombine.high %v402_v53, %v402_v53  ;;  %v418_v59 = vrot.slane %v402_v53, %v2508_v46  ;;  %v425_v60 = vrot.slane %v403_v54, %v2508_v46  ;;  %v433_v61 = vcombine.high %v411_v55, %v411_v55  ;;  %446 = vst.msk [vmem:[%s2519_s24] sm:$0x1] %vm445_vm2, %v411_v55  ;;  %v2132_v62 = vpop.f32.mrb[5].mxu0 }
 0x16c   : > { %v602_v63 = vcombine.high %v600_v56, %v600_v56  ;;  %v609_v0 = vrot.slane %v600_v56, %v2508_v46  ;;  %v810_v1 = vadd.f32 %v809_v25, %v739_v57 }
 0x16d   : > { %v432_v2 = vrot.slane %v404_v58, %v2508_v46  ;;  %v434_v3 = vcombine.high %v418_v59, %v418_v59  ;;  %v435_v4 = vcombine.high %v425_v60, %v425_v60  ;;  %447 = vst.msk [vmem:[%s2519_s24 + $0x8] sm:$0x1] %vm445_vm2, %v425_v60  ;;  %448 = vst.msk [vmem:[%s2519_s24 + $0x10] sm:$0x1] %vm445_vm2, %v433_v61 }
 0x16e   : > { %450 = vst.msk [vmem:[%s2519_s24 + $0x20] sm:$0x1] %vm445_vm2, %v418_v59  ;;  %v616_v5 = vrot.slane %v602_v63, %v2508_v46  ;;  %v617_v6 = vcombine.high %v609_v0, %v609_v0  ;;  %v625_v7 = vrot.slane %v609_v0, %v2508_v46  ;;  %v813_v8 = vadd.f32 %v810_v1, %v2505_v43  ;;  %v952_v9 = vpop.f32.mrb[6].mxu0 }
 0x16f   : > { %v436_v10 = vcombine.high %v432_v2, %v432_v2  ;;  %449 = vst.msk [vmem:[%s2519_s24 + $0x18] sm:$0x1] %vm445_vm2, %v435_v4  ;;  %451 = vst.msk [vmem:[%s2519_s24 + $0x28] sm:$0x1] %vm445_vm2, %v432_v2  ;;  %v1023_v11 = vadd.f32 %v1022_v27, %v952_v9  ;;  %v2142_v12 = vpop.f32.mrb[7].mxu0 }
 0x170   : > { %452 = vst.msk [vmem:[%s2519_s24 + $0x30] sm:$0x1] %vm445_vm2, %v434_v3  ;;  %v618_v13 = vcombine.high %v616_v5, %v616_v5  ;;  %v632_v14 = vrot.slane %v616_v5, %v2508_v46  ;;  %v639_v15 = vrot.slane %v617_v6, %v2508_v46  ;;  %v647_v16 = vcombine.high %v625_v7, %v625_v7 }
 0x171   : > { %659 = vst.msk [vmem:[%s2519_s24 + $0x1] sm:$0x1] %vm445_vm2, %v625_v7  ;;  %453 = vst.msk [vmem:[%s2519_s24 + $0x38] sm:$0x1] %vm445_vm2, %v436_v10  ;;  %v815_v17 = vcombine.high %v813_v8, %v813_v8  ;;  %v822_v18 = vrot.slane %v813_v8, %v2508_v46  ;;  %v1026_v19 = vadd.f32 %v1023_v11, %v2505_v43 }
 0x172   : > { %v646_v20 = vrot.slane %v618_v13, %v2508_v46  ;;  %v648_v21 = vcombine.high %v632_v14, %v632_v14  ;;  %v649_v22 = vcombine.high %v639_v15, %v639_v15  ;;  %660 = vst.msk [vmem:[%s2519_s24 + $0x9] sm:$0x1] %vm445_vm2, %v639_v15  ;;  %661 = vst.msk [vmem:[%s2519_s24 + $0x11] sm:$0x1] %vm445_vm2, %v647_v16  ;;  %v1165_v23 = vpop.f32.mrb[8].mxu0 }
 0x173   : > { %663 = vst.msk [vmem:[%s2519_s24 + $0x21] sm:$0x1] %vm445_vm2, %v632_v14  ;;  %v829_v24 = vrot.slane %v815_v17, %v2508_v46  ;;  %v830_v25 = vcombine.high %v822_v18, %v822_v18  ;;  %v838_v26 = vrot.slane %v822_v18, %v2508_v46  ;;  %v1028_v27 = vcombine.high %v1026_v19, %v1026_v19  ;;  %v2152_v28 = vpop.f32.mrb[9].mxu0 }
 0x174   : > { %v650_v30 = vcombine.high %v646_v20, %v646_v20  ;;  %662 = vst.msk [vmem:[%s2519_s24 + $0x19] sm:$0x1] %vm445_vm2, %v649_v22  ;;  %664 = vst.msk [vmem:[%s2519_s24 + $0x29] sm:$0x1] %vm445_vm2, %v646_v20  ;;  %v1035_v32 = vrot.slane %v1026_v19, %v2508_v46  ;;  %v1236_v34 = vadd.f32 %v2497_v29, %v1165_v23 }
 0x175   : > { %665 = vst.msk [vmem:[%s2519_s24 + $0x31] sm:$0x1] %vm445_vm2, %v648_v21  ;;  %v831_v36 = vcombine.high %v829_v24, %v829_v24  ;;  %v845_v37 = vrot.slane %v829_v24, %v2508_v46  ;;  %v852_v38 = vrot.slane %v830_v25, %v2508_v46  ;;  %v860_v39 = vcombine.high %v838_v26, %v838_v26 }
 0x176   : > { %872 = vst.msk [vmem:[%s2519_s24 + $0x2] sm:$0x1] %vm445_vm2, %v838_v26  ;;  %666 = vst.msk [vmem:[%s2519_s24 + $0x39] sm:$0x1] %vm445_vm2, %v650_v30  ;;  %v1042_v40 = vrot.slane %v1028_v27, %v2508_v46  ;;  %v1043_v41 = vcombine.high %v1035_v32, %v1035_v32  ;;  %v1051_v42 = vrot.slane %v1035_v32, %v2508_v46  ;;  %v1378_v44 = vpop.f32.mrb[10].mxu0 }
 0x177   : > { %v1239_v29 = vadd.f32 %v1236_v34, %v2505_v43  ;;  %v859_v45 = vrot.slane %v831_v36, %v2508_v46  ;;  %v861_v47 = vcombine.high %v845_v37, %v845_v37  ;;  %v862_v48 = vcombine.high %v852_v38, %v852_v38  ;;  %873 = vst.msk [vmem:[%s2519_s24 + $0xa] sm:$0x1] %vm445_vm2, %v852_v38  ;;  %v2162_v50 = vpop.f32.mrb[11].mxu0 }
 0x178   : > { %874 = vst.msk [vmem:[%s2519_s24 + $0x12] sm:$0x1] %vm445_vm2, %v860_v39  ;;  %876 = vst.msk [vmem:[%s2519_s24 + $0x22] sm:$0x1] %vm445_vm2, %v845_v37  ;;  %v1449_v49 = vadd.f32 %v2499_v31, %v1378_v44  ;;  %v1044_v51 = vcombine.high %v1042_v40, %v1042_v40  ;;  %v1058_v52 = vrot.slane %v1042_v40, %v2508_v46 }
 0x179   : > { %v1065_v53 = vrot.slane %v1043_v41, %v2508_v46  ;;  %v1073_v54 = vcombine.high %v1051_v42, %v1051_v42  ;;  %1085 = vst.msk [vmem:[%s2519_s24 + $0x3] sm:$0x1] %vm445_vm2, %v1051_v42  ;;  %v863_v55 = vcombine.high %v859_v45, %v859_v45  ;;  %875 = vst.msk [vmem:[%s2519_s24 + $0x1a] sm:$0x1] %vm445_vm2, %v862_v48 }
 0x17a   : > { %877 = vst.msk [vmem:[%s2519_s24 + $0x2a] sm:$0x1] %vm445_vm2, %v859_v45  ;;  %878 = vst.msk [vmem:[%s2519_s24 + $0x32] sm:$0x1] %vm445_vm2, %v861_v47  ;;  %v1241_v31 = vcombine.high %v1239_v29, %v1239_v29  ;;  %v1248_v56 = vrot.slane %v1239_v29, %v2508_v46  ;;  %v1452_v57 = vadd.f32 %v1449_v49, %v2505_v43  ;;  %v1591_v61 = vpop.f32.mrb[12].mxu0 }
 0x17b   : > { %v1072_v58 = vrot.slane %v1044_v51, %v2508_v46  ;;  %v1074_v59 = vcombine.high %v1058_v52, %v1058_v52  ;;  %v1075_v60 = vcombine.high %v1065_v53, %v1065_v53  ;;  %1086 = vst.msk [vmem:[%s2519_s24 + $0xb] sm:$0x1] %vm445_vm2, %v1065_v53  ;;  %1087 = vst.msk [vmem:[%s2519_s24 + $0x13] sm:$0x1] %vm445_vm2, %v1073_v54  ;;  %v2172_v2 = vpop.f32.mrb[13].mxu0 }
 0x17c   : > { %1089 = vst.msk [vmem:[%s2519_s24 + $0x23] sm:$0x1] %vm445_vm2, %v1058_v52  ;;  %879 = vst.msk [vmem:[%s2519_s24 + $0x3a] sm:$0x1] %vm445_vm2, %v863_v55  ;;  %v1255_v62 = vrot.slane %v1241_v31, %v2508_v46  ;;  %v1256_v63 = vcombine.high %v1248_v56, %v1248_v56  ;;  %v1264_v0 = vrot.slane %v1248_v56, %v2508_v46 }
 0x17d   : > { %v1454_v1 = vcombine.high %v1452_v57, %v1452_v57  ;;  %v1076_v3 = vcombine.high %v1072_v58, %v1072_v58  ;;  %1088 = vst.msk [vmem:[%s2519_s24 + $0x1b] sm:$0x1] %vm445_vm2, %v1075_v60  ;;  %1090 = vst.msk [vmem:[%s2519_s24 + $0x2b] sm:$0x1] %vm445_vm2, %v1072_v58  ;;  %v1461_v4 = vrot.slane %v1452_v57, %v2508_v46 }
 0x17e   : > { %1091 = vst.msk [vmem:[%s2519_s24 + $0x33] sm:$0x1] %vm445_vm2, %v1074_v59  ;;  %v1662_v5 = vadd.f32 %v2501_v33, %v1591_v61  ;;  %v1257_v6 = vcombine.high %v1255_v62, %v1255_v62  ;;  %v1271_v7 = vrot.slane %v1255_v62, %v2508_v46  ;;  %v1278_v8 = vrot.slane %v1256_v63, %v2508_v46  ;;  %v1804_v13 = vpop.f32.mrb[14].mxu0 }
 0x17f   : > { %v1286_v9 = vcombine.high %v1264_v0, %v1264_v0  ;;  %1298 = vst.msk [vmem:[%s2519_s24 + $0x4] sm:$0x1] %vm445_vm2, %v1264_v0  ;;  %1092 = vst.msk [vmem:[%s2519_s24 + $0x3b] sm:$0x1] %vm445_vm2, %v1076_v3  ;;  %v1468_v10 = vrot.slane %v1454_v1, %v2508_v46  ;;  %v1469_v11 = vcombine.high %v1461_v4, %v1461_v4  ;;  %v2182_v18 = vpop.f32.mrb[15].mxu0 }
 0x180   : > { %v1477_v12 = vrot.slane %v1461_v4, %v2508_v46  ;;  %v1665_v33 = vadd.f32 %v1662_v5, %v2505_v43  ;;  %v1285_v14 = vrot.slane %v1257_v6, %v2508_v46  ;;  %v1287_v15 = vcombine.high %v1271_v7, %v1271_v7  ;;  %1299 = vst.msk [vmem:[%s2519_s24 + $0xc] sm:$0x1] %vm445_vm2, %v1278_v8 }
 0x181   : > { %v1288_v16 = vcombine.high %v1278_v8, %v1278_v8  ;;  %1300 = vst.msk [vmem:[%s2519_s24 + $0x14] sm:$0x1] %vm445_vm2, %v1286_v9  ;;  %1302 = vst.msk [vmem:[%s2519_s24 + $0x24] sm:$0x1] %vm445_vm2, %v1271_v7  ;;  %v1875_v17 = vadd.f32 %v2503_v35, %v1804_v13  ;;  %v1470_v19 = vcombine.high %v1468_v10, %v1468_v10 }
 0x182   : > { %v1484_v20 = vrot.slane %v1468_v10, %v2508_v46  ;;  %v1491_v21 = vrot.slane %v1469_v11, %v2508_v46  ;;  %v1499_v22 = vcombine.high %v1477_v12, %v1477_v12  ;;  %1511 = vst.msk [vmem:[%s2519_s24 + $0x5] sm:$0x1] %vm445_vm2, %v1477_v12  ;;  %v1289_v23 = vcombine.high %v1285_v14, %v1285_v14 }
 0x183   : > { %1301 = vst.msk [vmem:[%s2519_s24 + $0x1c] sm:$0x1] %vm445_vm2, %v1288_v16  ;;  %1303 = vst.msk [vmem:[%s2519_s24 + $0x2c] sm:$0x1] %vm445_vm2, %v1285_v14  ;;  %v1667_v35 = vcombine.high %v1665_v33, %v1665_v33  ;;  %v1674_v24 = vrot.slane %v1665_v33, %v2508_v46  ;;  %v1878_v25 = vadd.f32 %v1875_v17, %v2505_v43 }
 0x184   : > { %1304 = vst.msk [vmem:[%s2519_s24 + $0x34] sm:$0x1] %vm445_vm2, %v1287_v15  ;;  %v1498_v26 = vrot.slane %v1470_v19, %v2508_v46  ;;  %v1500_v27 = vcombine.high %v1484_v20, %v1484_v20  ;;  %v1501_v28 = vcombine.high %v1491_v21, %v1491_v21  ;;  %1512 = vst.msk [vmem:[%s2519_s24 + $0xd] sm:$0x1] %vm445_vm2, %v1491_v21 }
 0x185   : > { %1513 = vst.msk [vmem:[%s2519_s24 + $0x15] sm:$0x1] %vm445_vm2, %v1499_v22  ;;  %1515 = vst.msk [vmem:[%s2519_s24 + $0x25] sm:$0x1] %vm445_vm2, %v1484_v20  ;;  %v1681_v30 = vrot.slane %v1667_v35, %v2508_v46  ;;  %v1682_v32 = vcombine.high %v1674_v24, %v1674_v24  ;;  %v1690_v34 = vrot.slane %v1674_v24, %v2508_v46 }
 0x186   : > { %1305 = vst.msk [vmem:[%s2519_s24 + $0x3c] sm:$0x1] %vm445_vm2, %v1289_v23  ;;  %v1880_v43 = vcombine.high %v1878_v25, %v1878_v25  ;;  %v1502_v36 = vcombine.high %v1498_v26, %v1498_v26  ;;  %1514 = vst.msk [vmem:[%s2519_s24 + $0x1d] sm:$0x1] %vm445_vm2, %v1501_v28  ;;  %v1887_v37 = vrot.slane %v1878_v25, %v2508_v46 }
 0x187   : > { %1516 = vst.msk [vmem:[%s2519_s24 + $0x2d] sm:$0x1] %vm445_vm2, %v1498_v26  ;;  %1517 = vst.msk [vmem:[%s2519_s24 + $0x35] sm:$0x1] %vm445_vm2, %v1500_v27  ;;  %v1683_v38 = vcombine.high %v1681_v30, %v1681_v30  ;;  %v1697_v39 = vrot.slane %v1681_v30, %v2508_v46  ;;  %v1704_v40 = vrot.slane %v1682_v32, %v2508_v46 }
 0x188   : > { %v1712_v41 = vcombine.high %v1690_v34, %v1690_v34  ;;  %1724 = vst.msk [vmem:[%s2519_s24 + $0x6] sm:$0x1] %vm445_vm2, %v1690_v34  ;;  %1518 = vst.msk [vmem:[%s2519_s24 + $0x3d] sm:$0x1] %vm445_vm2, %v1502_v36  ;;  %v1894_v42 = vrot.slane %v1880_v43, %v2508_v46  ;;  %v1895_v29 = vcombine.high %v1887_v37, %v1887_v37 }
 0x189   : > { %v1903_v44 = vrot.slane %v1887_v37, %v2508_v46  ;;  %v1711_v45 = vrot.slane %v1683_v38, %v2508_v46  ;;  %v1713_v47 = vcombine.high %v1697_v39, %v1697_v39  ;;  %v1714_v48 = vcombine.high %v1704_v40, %v1704_v40  ;;  %1725 = vst.msk [vmem:[%s2519_s24 + $0xe] sm:$0x1] %vm445_vm2, %v1704_v40 }
 0x18a   : > { %1726 = vst.msk [vmem:[%s2519_s24 + $0x16] sm:$0x1] %vm445_vm2, %v1712_v41  ;;  %1728 = vst.msk [vmem:[%s2519_s24 + $0x26] sm:$0x1] %vm445_vm2, %v1697_v39  ;;  %v1896_v49 = vcombine.high %v1894_v42, %v1894_v42  ;;  %v1910_v50 = vrot.slane %v1894_v42, %v2508_v46  ;;  %v1917_v51 = vrot.slane %v1895_v29, %v2508_v46 }
 0x18b   : > { %v1925_v52 = vcombine.high %v1903_v44, %v1903_v44  ;;  %1937 = vst.msk [vmem:[%s2519_s24 + $0x7] sm:$0x1] %vm445_vm2, %v1903_v44  ;;  %v1715_v53 = vcombine.high %v1711_v45, %v1711_v45  ;;  %1727 = vst.msk [vmem:[%s2519_s24 + $0x1e] sm:$0x1] %vm445_vm2, %v1714_v48 }
 0x18c   : > { %1729 = vst.msk [vmem:[%s2519_s24 + $0x2e] sm:$0x1] %vm445_vm2, %v1711_v45  ;;  %1730 = vst.msk [vmem:[%s2519_s24 + $0x36] sm:$0x1] %vm445_vm2, %v1713_v47  ;;  %v1924_v54 = vrot.slane %v1896_v49, %v2508_v46  ;;  %v1926_v55 = vcombine.high %v1910_v50, %v1910_v50  ;;  %v1927_v31 = vcombine.high %v1917_v51, %v1917_v51 }
 0x18d   : > { %1938 = vst.msk [vmem:[%s2519_s24 + $0xf] sm:$0x1] %vm445_vm2, %v1917_v51  ;;  %1939 = vst.msk [vmem:[%s2519_s24 + $0x17] sm:$0x1] %vm445_vm2, %v1925_v52 }
 0x18e   : > { %1941 = vst.msk [vmem:[%s2519_s24 + $0x27] sm:$0x1] %vm445_vm2, %v1910_v50  ;;  %1731 = vst.msk [vmem:[%s2519_s24 + $0x3e] sm:$0x1] %vm445_vm2, %v1715_v53  ;;  %v1928_v46 = vcombine.high %v1924_v54, %v1924_v54 }
 0x18f   : > { %1940 = vst.msk [vmem:[%s2519_s24 + $0x1f] sm:$0x1] %vm445_vm2, %v1927_v31  ;;  %1942 = vst.msk [vmem:[%s2519_s24 + $0x2f] sm:$0x1] %vm445_vm2, %v1924_v54 }
 0x190   : > { %1943 = vst.msk [vmem:[%s2519_s24 + $0x37] sm:$0x1] %vm445_vm2, %v1926_v55  ;;  %1944 = vst.msk [vmem:[%s2519_s24 + $0x3f] sm:$0x1] %vm445_vm2, %v1928_v46 }
 0x191   : > { %2264 = shalt.err (!%p2261_p5)
}
 0x192   : > { %s2265_s11 = scalar_lea.hbm %s2699_s5, 1024  ;;  %s2269_s14 = scalar_lea.hbm %s2763_s4, 2048 }
 0x193   : > { %p2266_p6 = scmp.ne.s32.totalorder %s2699_s5, %s2265_s11  ;;  %p2270_p10 = scmp.lt.u32.totalorder %s2699_s5, %s2763_s4 }
 0x194   : > { %p2271_p11 = scmp.lt.u32.totalorder %s2269_s14, %s2265_s11  ;;  %p2273_p13 = scmp.lt.u32.totalorder %s2265_s11, %s2699_s5 }
 0x195   : > { %p2267_p7 = pnand %p2266_p6, %p2404_p4 }
 0x196   : > { %p2272_p12 = por %p2271_p11, %p2270_p10 }
 0x197   : > { %p2268_p9 = pneg %p2267_p7 }
 0x198   : > { %p2274_p0 = por %p2273_p13, %p2272_p12 }
 0x19a   : > { %p2275_p1 = pnand %p2274_p0, %p2268_p9 }
 0x19c   : > { %2278 = shalt.err (!%p2275_p1)
}
 0x19d   : > { %s2337_s24 = smov 128   ;;  %s2338_s26 = smov 8  }
 0x19e   : > { %2188 = dma.vmem_to_hbm [thread:$0]  (%p2404_p4), %s2701_s29, 1024, %s2699_s5, %s2713_s6, %s2337_s24, %s2337_s24, %s2338_s26  }
 0x19f PF: > { %p2194_p2 = scmp.ge.s32.totalorder %s2329_s20, 2  ;;  %s1975_s18 = sand.u32 1, %s2309_s15  }
 0x1a0   : > { %s1976_s30 = scalar_lea.sflag [#allocation3], %s1975_s18 }
 0x1a1   : > { %p2191_p3 = pnand %p2194_p2, %p2411_p8 }
 0x1a3   : > { %2304 = dma.done.wait (!%p2191_p3), %s1976_s30, 1024  }
 0x1a4   : > { %2306 = vsyncadd (!%p2191_p3), %s1976_s30, 4294966272  ;;  %s17_s20 = sadd.s32 1, %s2329_s20   ;;  %s2766_s15 = smov %s2313_s16 }
 0x1a5   : > { %p14_p5 = scmp.ge.s32.totalorder %s17_s20, 4   ;;  %s2767_s16 = smov %s2317_s17 }
 0x1a6   : > { %s2768_s17 = smov %s2417_s28  ;;  %s2769_s18 = smov %s2325_s19 }
 0x1a7   : > { %s2770_s19 = smov %s2772_s23  ;;  %16 = sbr.rel (!%p14_p5) target bundleno = 4 (0x4), region = 78 }
 0x1ae   :  { %1981 = vsyncpa [#allocation3], 1 }
 0x1af   :  { %1983 = vsyncpa [#allocation3 + $0x1], 1 }

</bundles_post_ra>
